<compile_context>
chip_gen: v6e
topology: v6e:2x2x1
jax: 0.10.0
libtpu: 0.0.40
codegen_flags: <defaults>
</compile_context>

<pallas_src>
import jax
import jax.numpy as jnp
from jax import lax
from jax.experimental import pallas as pl
from jax.experimental.pallas import tpu as pltpu

LATENT_DIM = 16
HIDDEN = 32
N_CLASSES = 2
STATS_W = 128                      # packed stats width: 4*16 heads | 16 z | 32 bias | pad
_OFF_Z = 4 * LATENT_DIM            # 64
_OFF_BIAS = _OFF_Z + LATENT_DIM    # 80
VMEM_LIMIT = 32 * 1024 * 1024      # safe on v5e/v6e/v7x (raises v5e's 16 MiB default)
FUSED_VMEM_BUDGET = 24 * 1024 * 1024


# ---------------------------------------------------------------------------
# Parameter packing (wrapper-side, tiny): concatenate the 4 encoder heads into
# one operand; pre-transpose the unet weights into channels-first orientation.
# ---------------------------------------------------------------------------
def _pack_params(params):
    pp, pq, pu = params["prior"], params["posterior"], params["unet"]
    w_heads = jnp.concatenate(
        [pp["w_mu"], pp["w_lv"], pq["w_mu"], pq["w_lv"]], axis=1)        # [C, 4L]
    b_heads = jnp.concatenate(
        [pp["b_mu"], pp["b_lv"], pq["b_mu"], pq["b_lv"]], axis=1)        # [1, 4L]
    return {
        "w_heads": w_heads, "b_heads": b_heads,
        "w_headsT": w_heads.T, "b_heads_col": b_heads.T,                 # [4L,C],[4L,1]
        "w1z": pu["w1z"], "b1": pu["b1"],                                # [L,H],[1,H]
        "w1zT": pu["w1z"].T, "b1_col": pu["b1"].T,                       # [H,L],[H,1]
        "w1xT": pu["w1x"].T,                                             # [H,C]
        "w2T": pu["w2"].T, "b2_col": pu["b2"].T,                         # [NC,H],[NC,1]
    }


# ---------------------------------------------------------------------------
# Fused single-pass kernel (x resident per batch): pool + heads + reparam +
# bias fold + per-pixel MLP.  grid=(B,) "parallel".
# ---------------------------------------------------------------------------
def _make_fused_kernel(inv_hw, hw, chunk, use_posterior):
    L = LATENT_DIM
    n_full = hw // chunk
    rem = hw - n_full * chunk

    def _mlp(xc, w1xT, bias, w2T, b2):
        h = jnp.dot(w1xT, xc, preferred_element_type=jnp.float32) + bias
        h = jnp.maximum(h, 0.0)
        return jnp.dot(w2T, h, preferred_element_type=jnp.float32) + b2

    def kernel(x_ref, eps_ref, wheadsT_ref, bheads_ref, w1zT_ref, b1_ref,
               w1xT_ref, w2T_ref, b2_ref, stats_ref, o_ref):
        # ---- shared global-average pool (x read from HBM only once) ----
        pooled = jnp.sum(x_ref[0], axis=1, keepdims=True) * inv_hw            # [C,1]
        # ---- packed prior+posterior heads: one dot instead of four ----
        heads = jnp.dot(wheadsT_ref[...], pooled,
                        preferred_element_type=jnp.float32) + bheads_ref[...]  # [4L,1]
        mu_p, lv_p = heads[0:L], heads[L:2 * L]
        mu_q, lv_q = heads[2 * L:3 * L], heads[3 * L:4 * L]
        mu, lv = (mu_q, lv_q) if use_posterior else (mu_p, lv_p)
        # ---- reparameterization ----
        z = mu + eps_ref[0] * jnp.exp(0.5 * lv)                                # [L,1]
        # ---- fold z into the head bias: bias_b = W1z^T z + b1 ----
        bias = jnp.dot(w1zT_ref[...], z,
                       preferred_element_type=jnp.float32) + b1_ref[...]       # [H,1]
        # ---- single packed stats column: one output buffer / one writeback ----
        stats_ref[0, 0:4 * L, :] = heads
        stats_ref[0, 4 * L:5 * L, :] = z
        stats_ref[0, 5 * L:5 * L + HIDDEN, :] = bias
        stats_ref[0, 5 * L + HIDDEN:, :] = jnp.zeros(
            (STATS_W - 5 * L - HIDDEN, 1), jnp.float32)
        # ---- per-pixel MLP over HW chunks of the VMEM-resident x block ----
        w1xT = w1xT_ref[...]
        w2T = w2T_ref[...]
        b2 = b2_ref[...]
        if n_full > 0:
            def body(i, carry):
                s = pl.multiple_of(i * chunk, chunk)
                o_ref[0, :, pl.ds(s, chunk)] = _mlp(
                    x_ref[0, :, pl.ds(s, chunk)], w1xT, bias, w2T, b2)
                return carry
            lax.fori_loop(0, n_full, body, 0)
        if rem > 0:
            s0 = n_full * chunk
            o_ref[0, :, s0:] = _mlp(x_ref[0, :, s0:], w1xT, bias, w2T, b2)

    return kernel


def _fused_fits(c, hw):
    # x block + logits block, f32, double-buffered across the batch grid.
    return 2 * 4 * hw * (c + N_CLASSES) + (1 << 20) <= FUSED_VMEM_BUDGET


def _fused_forward(x_flat, eps, pk, training):
    B, C, HW = x_flat.shape
    chunk = max(128, min(2048, (HW // 128) * 128)) if HW >= 128 else HW

    stats3, logits = pl.pallas_call(
        _make_fused_kernel(1.0 / HW, HW, chunk, training),
        out_shape=(
            jax.ShapeDtypeStruct((B, STATS_W, 1), jnp.float32),
            jax.ShapeDtypeStruct((B, N_CLASSES, HW), jnp.float32),
        ),
        grid=(B,),
        in_specs=[
            pl.BlockSpec((1, C, HW), lambda b: (b, 0, 0)),            # x (resident)
            pl.BlockSpec((1, LATENT_DIM, 1), lambda b: (b, 0, 0)),    # eps column
            pl.BlockSpec((4 * LATENT_DIM, C), lambda b: (0, 0)),      # packed head W^T
            pl.BlockSpec((4 * LATENT_DIM, 1), lambda b: (0, 0)),      # packed head b
            pl.BlockSpec((HIDDEN, LATENT_DIM), lambda b: (0, 0)),     # W1z^T
            pl.BlockSpec((HIDDEN, 1), lambda b: (0, 0)),              # b1
            pl.BlockSpec((HIDDEN, C), lambda b: (0, 0)),              # W1x^T
            pl.BlockSpec((N_CLASSES, HIDDEN), lambda b: (0, 0)),      # W2^T
            pl.BlockSpec((N_CLASSES, 1), lambda b: (0, 0)),           # b2
        ],
        out_specs=(
            pl.BlockSpec((1, STATS_W, 1), lambda b: (b, 0, 0)),
            pl.BlockSpec((1, N_CLASSES, HW), lambda b: (b, 0, 0)),
        ),
        compiler_params=pltpu.CompilerParams(
            dimension_semantics=("parallel",),
            vmem_limit_bytes=VMEM_LIMIT),
    )(x_flat, eps[:, :, None], pk["w_headsT"], pk["b_heads_col"],
      pk["w1zT"], pk["b1_col"], pk["w1xT"], pk["w2T"], pk["b2_col"])

    return stats3[:, :, 0], logits


# ---------------------------------------------------------------------------
# Fallback streaming path (x too large to hold resident): two pipelined kernels.
# ---------------------------------------------------------------------------
def _make_stream_encoder_kernel(inv_hw, hw, tile, use_posterior):
    L = LATENT_DIM
    divisible = (hw % tile == 0)

    def kernel(x_ref, eps_ref, wheads_ref, bheads_ref, w1z_ref, b1_ref,
               stats_ref, acc_ref):
        t = pl.program_id(0)

        @pl.when(t == 0)
        def _init():
            acc_ref[...] = jnp.zeros_like(acc_ref)

        xb = x_ref[...]                                                  # [B,C,tile]
        if not divisible:
            col = lax.broadcasted_iota(jnp.int32, (1, 1, tile), 2) + t * tile
            xb = jnp.where(col < hw, xb, 0.0)                            # mask OOB tail
        acc_ref[...] += jnp.sum(xb, axis=2)

        @pl.when(t == pl.num_programs(0) - 1)
        def _finalize():
            pooled = acc_ref[...] * inv_hw                               # [B,C]
            heads = jnp.dot(pooled, wheads_ref[...],
                            preferred_element_type=jnp.float32) + bheads_ref[...]
            mu_p, lv_p = heads[:, 0:L], heads[:, L:2 * L]
            mu_q, lv_q = heads[:, 2 * L:3 * L], heads[:, 3 * L:4 * L]
            mu, lv = (mu_q, lv_q) if use_posterior else (mu_p, lv_p)
            z = mu + eps_ref[...] * jnp.exp(0.5 * lv)                    # [B,L]
            bias = jnp.dot(z, w1z_ref[...],
                           preferred_element_type=jnp.float32) + b1_ref[...]
            stats_ref[:, 0:4 * L] = heads
            stats_ref[:, 4 * L:5 * L] = z
            stats_ref[:, 5 * L:5 * L + HIDDEN] = bias
            stats_ref[:, 5 * L + HIDDEN:] = jnp.zeros(
                (heads.shape[0], STATS_W - 5 * L - HIDDEN), jnp.float32)

    return kernel


def _stream_encoder(x_flat, eps, pk, training, tile):
    B, C, HW = x_flat.shape
    return pl.pallas_call(
        _make_stream_encoder_kernel(1.0 / HW, HW, tile, training),
        out_shape=jax.ShapeDtypeStruct((B, STATS_W), jnp.float32),
        grid=(pl.cdiv(HW, tile),),
        in_specs=[
            pl.BlockSpec((B, C, tile), lambda t: (0, 0, t)),
            pl.BlockSpec((B, LATENT_DIM), lambda t: (0, 0)),
            pl.BlockSpec((C, 4 * LATENT_DIM), lambda t: (0, 0)),
            pl.BlockSpec((1, 4 * LATENT_DIM), lambda t: (0, 0)),
            pl.BlockSpec((LATENT_DIM, HIDDEN), lambda t: (0, 0)),
            pl.BlockSpec((1, HIDDEN), lambda t: (0, 0)),
        ],
        out_specs=pl.BlockSpec((B, STATS_W), lambda t: (0, 0)),
        scratch_shapes=[pltpu.VMEM((B, C), jnp.float32)],
        compiler_params=pltpu.CompilerParams(
            dimension_semantics=("arbitrary",),
            vmem_limit_bytes=VMEM_LIMIT),
    )(x_flat, eps, pk["w_heads"], pk["b_heads"], pk["w1z"], pk["b1"])


def _stream_head_kernel(x_ref, bias_ref, w1xT_ref, w2T_ref, b2_ref, o_ref):
    h = jnp.dot(w1xT_ref[...], x_ref[0],
                preferred_element_type=jnp.float32) + bias_ref[0]        # [H,tile]
    h = jnp.maximum(h, 0.0)
    o_ref[0] = jnp.dot(w2T_ref[...], h,
                       preferred_element_type=jnp.float32) + b2_ref[...]


def _stream_head(x_flat, bias_col, pk, tile):
    B, C, HW = x_flat.shape
    return pl.pallas_call(
        _stream_head_kernel,
        out_shape=jax.ShapeDtypeStruct((B, N_CLASSES, HW), jnp.float32),
        grid=(B, pl.cdiv(HW, tile)),
        in_specs=[
            pl.BlockSpec((1, C, tile), lambda b, t: (b, 0, t)),
            pl.BlockSpec((1, HIDDEN, 1), lambda b, t: (b, 0, 0)),
            pl.BlockSpec((HIDDEN, C), lambda b, t: (0, 0)),
            pl.BlockSpec((N_CLASSES, HIDDEN), lambda b, t: (0, 0)),
            pl.BlockSpec((N_CLASSES, 1), lambda b, t: (0, 0)),
        ],
        out_specs=pl.BlockSpec((1, N_CLASSES, tile), lambda b, t: (b, 0, t)),
        compiler_params=pltpu.CompilerParams(
            dimension_semantics=("parallel", "parallel"),
            vmem_limit_bytes=VMEM_LIMIT),
    )(x_flat, bias_col, pk["w1xT"], pk["w2T"], pk["b2_col"])


def _streaming_forward(x_flat, eps, pk, training, tile_cap=32768):
    B, C, HW = x_flat.shape
    tile = max(128, min(tile_cap, pl.cdiv(HW, 128) * 128))
    stats = _stream_encoder(x_flat, eps, pk, training, tile)
    bias_col = stats[:, _OFF_BIAS:_OFF_BIAS + HIDDEN][..., None]        # [B,H,1]
    logits = _stream_head(x_flat, bias_col, pk, tile)
    return stats, logits


# ---------------------------------------------------------------------------
# Parameter init (deterministic, synthetic sub-networks)
# ---------------------------------------------------------------------------
def init_params(key, in_channels):
    ks = jax.random.split(key, 12)

    def enc(k0, k1, k2, k3):
        return {
            "w_mu": 0.1 * jax.random.normal(k0, (in_channels, LATENT_DIM), jnp.float32),
            "b_mu": 0.05 * jax.random.normal(k1, (1, LATENT_DIM), jnp.float32),
            "w_lv": 0.1 * jax.random.normal(k2, (in_channels, LATENT_DIM), jnp.float32),
            "b_lv": 0.05 * jax.random.normal(k3, (1, LATENT_DIM), jnp.float32),
        }

    return {
        "prior": enc(*ks[0:4]),
        "posterior": enc(*ks[4:8]),
        "unet": {
            "w1x": 0.1 * jax.random.normal(ks[8], (in_channels, HIDDEN), jnp.float32),
            "w1z": 0.1 * jax.random.normal(ks[9], (LATENT_DIM, HIDDEN), jnp.float32),
            "b1": 0.05 * jax.random.normal(ks[10], (1, HIDDEN), jnp.float32),
            "w2": 0.1 * jax.random.normal(ks[11], (HIDDEN, N_CLASSES), jnp.float32),
            "b2": 0.05 * jnp.ones((1, N_CLASSES), jnp.float32),
        },
    }


# ---------------------------------------------------------------------------
# Full forward pass (PyTorch module semantics, distribution_type='gaussian')
# ---------------------------------------------------------------------------
def probabilistic_segmentation_forward(x, params, rng, training=True,
                                        force_streaming=False,
                                        stream_tile_cap=32768):
    B, C, H, W = x.shape
    HW = H * W
    x_flat = x.reshape(B, C, HW)                    # free reshape of NCHW
    eps = jax.random.normal(rng, (B, LATENT_DIM), dtype=jnp.float32)
    pk = _pack_params(params)

    if _fused_fits(C, HW) and not force_streaming:
        stats, logits_flat = _fused_forward(x_flat, eps, pk, training)
    else:
        stats, logits_flat = _streaming_forward(x_flat, eps, pk, training,
                                                tile_cap=stream_tile_cap)

    logits = logits_flat.reshape(B, N_CLASSES, H, W)   # free reshape, NCHW out
    L = LATENT_DIM
    return {
        "logits": logits,
        "z": stats[:, _OFF_Z:_OFF_Z + L],
        "prior_params": {"mu": stats[:, 0:L], "log_var": stats[:, L:2 * L]},
        "posterior_params": {"mu": stats[:, 2 * L:3 * L], "log_var": stats[:, 3 * L:4 * L]},
    }


# ---------------------------------------------------------------------------
# Pure-JAX reference (correctness check)
# ---------------------------------------------------------------------------
def _reference_forward(x, params, rng, training=True):
    B, C, H, W = x.shape
    pooled = jnp.mean(x, axis=(2, 3))                                     # [B,C]

    def heads(p):
        return pooled @ p["w_mu"] + p["b_mu"], pooled @ p["w_lv"] + p["b_lv"]

    mu_p, lv_p = heads(params["prior"])
    mu_q, lv_q = heads(params["posterior"])
    mu, lv = (mu_q, lv_q) if training else (mu_p, lv_p)
    eps = jax.random.normal(rng, (B, LATENT_DIM), dtype=jnp.float32)
    z = mu + eps * jnp.exp(0.5 * lv)

    pu = params["unet"]
    x_rows = jnp.transpose(x, (0, 2, 3, 1)).reshape(B, H * W, C)
    h = x_rows @ pu["w1x"] + (z @ pu["w1z"] + pu["b1"])[:, None, :]
    h = jnp.maximum(h, 0.0)
    o = h @ pu["w2"] + pu["b2"]
    logits = jnp.transpose(o.reshape(B, H, W, N_CLASSES), (0, 3, 1, 2))
    return {"logits": logits, "z": z,
            "prior_params": {"mu": mu_p, "log_var": lv_p},
            "posterior_params": {"mu": mu_q, "log_var": lv_q}}


def _check(out, ref):
    assert jnp.allclose(out["logits"], ref["logits"], atol=2e-2, rtol=2e-2), "logits"
    assert jnp.allclose(out["z"], ref["z"], atol=2e-2, rtol=2e-2), "z"
    for grp in ("prior_params", "posterior_params"):
        for k in ("mu", "log_var"):
            assert jnp.allclose(out[grp][k], ref[grp][k], atol=2e-2, rtol=2e-2), (grp, k)


if __name__ == "__main__":
    key = jax.random.PRNGKey(0)
    k_x, k_x2, k_p, k_eps = jax.random.split(key, 4)

    B, C, H, W = 2, 4, 16, 16
    x = jax.random.normal(k_x, (B, C, H, W), dtype=jnp.float32)
    params = init_params(k_p, C)

    # Fused single-pass path, training (posterior sampling).
    out = probabilistic_segmentation_forward(x, params, k_eps, training=True)
    jax.block_until_ready(out)
    assert out["logits"].shape == (B, N_CLASSES, H, W)
    assert out["z"].shape == (B, LATENT_DIM)
    _check(out, _reference_forward(x, params, k_eps, training=True))

    # Fused path, eval (prior sampling).
    out_eval = probabilistic_segmentation_forward(x, params, k_eps, training=False)
    jax.block_until_ready(out_eval)
    _check(out_eval, _reference_forward(x, params, k_eps, training=False))

    # Fused path at a non-128-multiple spatial size (exercises the remainder chunk).
    x2 = jax.random.normal(k_x2, (B, C, 18, 18), dtype=jnp.float32)
    out2 = probabilistic_segmentation_forward(x2, params, k_eps, training=True)
    jax.block_until_ready(out2)
    _check(out2, _reference_forward(x2, params, k_eps, training=True))

    # Forced streaming fallback (small tiles -> multi-step pipelined grids).
    out_s = probabilistic_segmentation_forward(x, params, k_eps, training=True,
                                               force_streaming=True,
                                               stream_tile_cap=128)
    jax.block_until_ready(out_s)
    _check(out_s, _reference_forward(x, params, k_eps, training=True))

    print("KERNEL_OK")
</pallas_src>

<mosaic_0001>
module attributes {stable_mosaic.version = 11 : i64} {
  func.func @kernel(%arg0: i32, %arg1: memref<1x4x256xf32, #tpu.memory_space<vmem>>, %arg2: memref<1x16x1xf32, #tpu.memory_space<vmem>>, %arg3: memref<64x4xf32, #tpu.memory_space<vmem>>, %arg4: memref<64x1xf32, #tpu.memory_space<vmem>>, %arg5: memref<32x16xf32, #tpu.memory_space<vmem>>, %arg6: memref<32x1xf32, #tpu.memory_space<vmem>>, %arg7: memref<32x4xf32, #tpu.memory_space<vmem>>, %arg8: memref<2x32xf32, #tpu.memory_space<vmem>>, %arg9: memref<2x1xf32, #tpu.memory_space<vmem>>, %arg10: memref<1x128x1xf32, #tpu.memory_space<vmem>>, %arg11: memref<1x2x256xf32, #tpu.memory_space<vmem>>) attributes {dimension_semantics = [#tpu.dimension_semantics<parallel>], iteration_bounds = array<i64: 2>, scalar_prefetch = 0 : i64, scratch_operands = 0 : i64, tpu.core_type = #tpu.core_type<tc>, window_params = [{transform_indices = @transform_0, window_bounds = array<i64: 1, 4, 256>}, {transform_indices = @transform_1, window_bounds = array<i64: 1, 16, 1>}, {pipeline_mode = #tpu.pipeline_mode<synchronous>, transform_indices = @transform_2, window_bounds = array<i64: 64, 4>}, {pipeline_mode = #tpu.pipeline_mode<synchronous>, transform_indices = @transform_3, window_bounds = array<i64: 64, 1>}, {pipeline_mode = #tpu.pipeline_mode<synchronous>, transform_indices = @transform_4, window_bounds = array<i64: 32, 16>}, {pipeline_mode = #tpu.pipeline_mode<synchronous>, transform_indices = @transform_5, window_bounds = array<i64: 32, 1>}, {pipeline_mode = #tpu.pipeline_mode<synchronous>, transform_indices = @transform_6, window_bounds = array<i64: 32, 4>}, {pipeline_mode = #tpu.pipeline_mode<synchronous>, transform_indices = @transform_7, window_bounds = array<i64: 2, 32>}, {pipeline_mode = #tpu.pipeline_mode<synchronous>, transform_indices = @transform_8, window_bounds = array<i64: 2, 1>}, {transform_indices = @transform_9, window_bounds = array<i64: 1, 128, 1>}, {transform_indices = @transform_10, window_bounds = array<i64: 1, 2, 256>}]} {
    %c0 = arith.constant 0 : index
    %c0_0 = arith.constant 0 : index
    %c0_1 = arith.constant 0 : index
    %0 = vector.load %arg1[%c0, %c0_0, %c0_1] : memref<1x4x256xf32, #tpu.memory_space<vmem>>, vector<1x4x256xf32>
    %1 = vector.shape_cast %0 : vector<1x4x256xf32> to vector<4x256xf32>
    %cst = arith.constant dense<0.000000e+00> : vector<4xf32>
    %2 = vector.multi_reduction <add>, %1, %cst [1] : vector<4x256xf32> to vector<4xf32>
    %3 = vector.shape_cast %2 : vector<4xf32> to vector<4x1xf32>
    %cst_2 = arith.constant 3.906250e-03 : f32
    %4 = vector.broadcast %cst_2 : f32 to vector<4x1xf32>
    %5 = arith.mulf %3, %4 : vector<4x1xf32>
    %c0_3 = arith.constant 0 : index
    %c0_4 = arith.constant 0 : index
    %6 = vector.load %arg3[%c0_3, %c0_4] : memref<64x4xf32, #tpu.memory_space<vmem>>, vector<64x4xf32>
    %cst_5 = arith.constant dense<0.000000e+00> : vector<64x1xf32>
    %7 = tpu.matmul %6, %5, %cst_5 {dimension_numbers = #tpu.dot_dimension_numbers<[1], [0], [0], [1], [0, 0, 1, 1], [], []>} : vector<64x4xf32>, vector<4x1xf32>, vector<64x1xf32> -> vector<64x1xf32>
    %c0_6 = arith.constant 0 : index
    %c0_7 = arith.constant 0 : index
    %8 = vector.load %arg4[%c0_6, %c0_7] : memref<64x1xf32, #tpu.memory_space<vmem>>, vector<64x1xf32>
    %9 = arith.addf %7, %8 : vector<64x1xf32>
    %10 = vector.extract_strided_slice %9 {offsets = [32, 0], sizes = [16, 1], strides = [1, 1]} : vector<64x1xf32> to vector<16x1xf32>
    %11 = vector.extract_strided_slice %9 {offsets = [48, 0], sizes = [16, 1], strides = [1, 1]} : vector<64x1xf32> to vector<16x1xf32>
    %c0_8 = arith.constant 0 : index
    %c0_9 = arith.constant 0 : index
    %c0_10 = arith.constant 0 : index
    %12 = vector.load %arg2[%c0_8, %c0_9, %c0_10] : memref<1x16x1xf32, #tpu.memory_space<vmem>>, vector<1x16x1xf32>
    %13 = vector.shape_cast %12 : vector<1x16x1xf32> to vector<16x1xf32>
    %cst_11 = arith.constant 5.000000e-01 : f32
    %14 = vector.broadcast %cst_11 : f32 to vector<16x1xf32>
    %15 = arith.mulf %14, %11 : vector<16x1xf32>
    %16 = math.exp %15 : vector<16x1xf32>
    %17 = arith.mulf %13, %16 : vector<16x1xf32>
    %18 = arith.addf %10, %17 : vector<16x1xf32>
    %c0_12 = arith.constant 0 : index
    %c0_13 = arith.constant 0 : index
    %19 = vector.load %arg5[%c0_12, %c0_13] : memref<32x16xf32, #tpu.memory_space<vmem>>, vector<32x16xf32>
    %cst_14 = arith.constant dense<0.000000e+00> : vector<32x1xf32>
    %20 = tpu.matmul %19, %18, %cst_14 {dimension_numbers = #tpu.dot_dimension_numbers<[1], [0], [0], [1], [0, 0, 1, 1], [], []>} : vector<32x16xf32>, vector<16x1xf32>, vector<32x1xf32> -> vector<32x1xf32>
    %c0_15 = arith.constant 0 : index
    %c0_16 = arith.constant 0 : index
    %21 = vector.load %arg6[%c0_15, %c0_16] : memref<32x1xf32, #tpu.memory_space<vmem>>, vector<32x1xf32>
    %22 = arith.addf %20, %21 : vector<32x1xf32>
    %c0_17 = arith.constant 0 : index
    %c0_18 = arith.constant 0 : index
    %c0_19 = arith.constant 0 : index
    %23 = vector.load %arg10[%c0_17, %c0_18, %c0_19] : memref<1x128x1xf32, #tpu.memory_space<vmem>>, vector<1x64x1xf32>
    %24 = vector.shape_cast %23 : vector<1x64x1xf32> to vector<64x1xf32>
    %25 = vector.shape_cast %9 : vector<64x1xf32> to vector<1x64x1xf32>
    tpu.vector_store %arg10[%c0_17, %c0_18, %c0_19], %25 {strides = array<i32>} : memref<1x128x1xf32, #tpu.memory_space<vmem>>, vector<1x64x1xf32>,
    %c0_20 = arith.constant 0 : index
    %c64 = arith.constant 64 : index
    %c0_21 = arith.constant 0 : index
    %26 = vector.load %arg10[%c0_20, %c64, %c0_21] : memref<1x128x1xf32, #tpu.memory_space<vmem>>, vector<1x16x1xf32>
    %27 = vector.shape_cast %26 : vector<1x16x1xf32> to vector<16x1xf32>
    %28 = vector.shape_cast %18 : vector<16x1xf32> to vector<1x16x1xf32>
    tpu.vector_store %arg10[%c0_20, %c64, %c0_21], %28 {strides = array<i32>} : memref<1x128x1xf32, #tpu.memory_space<vmem>>, vector<1x16x1xf32>,
    %c0_22 = arith.constant 0 : index
    %c80 = arith.constant 80 : index
    %c0_23 = arith.constant 0 : index
    %29 = vector.load %arg10[%c0_22, %c80, %c0_23] : memref<1x128x1xf32, #tpu.memory_space<vmem>>, vector<1x32x1xf32>
    %30 = vector.shape_cast %29 : vector<1x32x1xf32> to vector<32x1xf32>
    %31 = vector.shape_cast %22 : vector<32x1xf32> to vector<1x32x1xf32>
    tpu.vector_store %arg10[%c0_22, %c80, %c0_23], %31 {strides = array<i32>} : memref<1x128x1xf32, #tpu.memory_space<vmem>>, vector<1x32x1xf32>,
    %cst_24 = arith.constant 0.000000e+00 : f32
    %32 = vector.broadcast %cst_24 : f32 to vector<16x1xf32>
    %c0_25 = arith.constant 0 : index
    %c112 = arith.constant 112 : index
    %c0_26 = arith.constant 0 : index
    %33 = vector.load %arg10[%c0_25, %c112, %c0_26] : memref<1x128x1xf32, #tpu.memory_space<vmem>>, vector<1x16x1xf32>
    %34 = vector.shape_cast %33 : vector<1x16x1xf32> to vector<16x1xf32>
    %35 = vector.shape_cast %32 : vector<16x1xf32> to vector<1x16x1xf32>
    tpu.vector_store %arg10[%c0_25, %c112, %c0_26], %35 {strides = array<i32>} : memref<1x128x1xf32, #tpu.memory_space<vmem>>, vector<1x16x1xf32>,
    %c0_27 = arith.constant 0 : index
    %c0_28 = arith.constant 0 : index
    %36 = vector.load %arg7[%c0_27, %c0_28] : memref<32x4xf32, #tpu.memory_space<vmem>>, vector<32x4xf32>
    %c0_29 = arith.constant 0 : index
    %c0_30 = arith.constant 0 : index
    %37 = vector.load %arg8[%c0_29, %c0_30] : memref<2x32xf32, #tpu.memory_space<vmem>>, vector<2x32xf32>
    %c0_31 = arith.constant 0 : index
    %c0_32 = arith.constant 0 : index
    %38 = vector.load %arg9[%c0_31, %c0_32] : memref<2x1xf32, #tpu.memory_space<vmem>>, vector<2x1xf32>
    %c0_i32 = arith.constant 0 : i32
    %c256_i32 = arith.constant 256 : i32
    %39 = arith.muli %c0_i32, %c256_i32 : i32
    %40 = tpu.assume_multiple %39, 256 : i32
    %c0_33 = arith.constant 0 : index
    %c0_34 = arith.constant 0 : index
    %41 = arith.index_cast %40 : i32 to index
    %42 = vector.load %arg1[%c0_33, %c0_34, %41] : memref<1x4x256xf32, #tpu.memory_space<vmem>>, vector<1x4x256xf32>
    %43 = vector.shape_cast %42 : vector<1x4x256xf32> to vector<4x256xf32>
    %cst_35 = arith.constant dense<0.000000e+00> : vector<32x256xf32>
    %44 = tpu.matmul %36, %43, %cst_35 {dimension_numbers = #tpu.dot_dimension_numbers<[1], [0], [0], [1], [0, 0, 1, 1], [], []>} : vector<32x4xf32>, vector<4x256xf32>, vector<32x256xf32> -> vector<32x256xf32>
    %45 = vector.broadcast %22 : vector<32x1xf32> to vector<32x256xf32>
    %46 = arith.addf %44, %45 : vector<32x256xf32>
    %cst_36 = arith.constant 0.000000e+00 : f32
    %47 = vector.broadcast %cst_36 : f32 to vector<32x256xf32>
    %48 = arith.maximumf %46, %47 : vector<32x256xf32>
    %cst_37 = arith.constant dense<0.000000e+00> : vector<2x256xf32>
    %49 = tpu.matmul %37, %48, %cst_37 {dimension_numbers = #tpu.dot_dimension_numbers<[1], [0], [0], [1], [0, 0, 1, 1], [], []>} : vector<2x32xf32>, vector<32x256xf32>, vector<2x256xf32> -> vector<2x256xf32>
    %50 = vector.broadcast %38 : vector<2x1xf32> to vector<2x256xf32>
    %51 = arith.addf %49, %50 : vector<2x256xf32>
    %c0_38 = arith.constant 0 : index
    %c0_39 = arith.constant 0 : index
    %52 = arith.index_cast %40 : i32 to index
    %53 = vector.load %arg11[%c0_38, %c0_39, %52] : memref<1x2x256xf32, #tpu.memory_space<vmem>>, vector<1x2x256xf32>
    %54 = vector.shape_cast %53 : vector<1x2x256xf32> to vector<2x256xf32>
    %55 = vector.shape_cast %51 : vector<2x256xf32> to vector<1x2x256xf32>
    tpu.vector_store %arg11[%c0_38, %c0_39, %52], %55 {strides = array<i32>} : memref<1x2x256xf32, #tpu.memory_space<vmem>>, vector<1x2x256xf32>,
    %c1_i32 = arith.constant 1 : i32
    return
  }
  func.func @transform_0(%arg0: i32) -> (i32, i32, i32) {
    %c0_i32 = arith.constant 0 : i32
    %c0_i32_0 = arith.constant 0 : i32
    %c0_i32_1 = arith.constant 0 : i32
    return %arg0, %c0_i32, %c0_i32_0 : i32, i32, i32
  }
  func.func @transform_1(%arg0: i32) -> (i32, i32, i32) {
    %c0_i32 = arith.constant 0 : i32
    %c0_i32_0 = arith.constant 0 : i32
    %c0_i32_1 = arith.constant 0 : i32
    return %arg0, %c0_i32, %c0_i32_0 : i32, i32, i32
  }
  func.func @transform_2(%arg0: i32) -> (i32, i32) {
    %c0_i32 = arith.constant 0 : i32
    %c0_i32_0 = arith.constant 0 : i32
    %c0_i32_1 = arith.constant 0 : i32
    return %c0_i32, %c0_i32_0 : i32, i32
  }
  func.func @transform_3(%arg0: i32) -> (i32, i32) {
    %c0_i32 = arith.constant 0 : i32
    %c0_i32_0 = arith.constant 0 : i32
    %c0_i32_1 = arith.constant 0 : i32
    return %c0_i32, %c0_i32_0 : i32, i32
  }
  func.func @transform_4(%arg0: i32) -> (i32, i32) {
    %c0_i32 = arith.constant 0 : i32
    %c0_i32_0 = arith.constant 0 : i32
    %c0_i32_1 = arith.constant 0 : i32
    return %c0_i32, %c0_i32_0 : i32, i32
  }
  func.func @transform_5(%arg0: i32) -> (i32, i32) {
    %c0_i32 = arith.constant 0 : i32
    %c0_i32_0 = arith.constant 0 : i32
    %c0_i32_1 = arith.constant 0 : i32
    return %c0_i32, %c0_i32_0 : i32, i32
  }
  func.func @transform_6(%arg0: i32) -> (i32, i32) {
    %c0_i32 = arith.constant 0 : i32
    %c0_i32_0 = arith.constant 0 : i32
    %c0_i32_1 = arith.constant 0 : i32
    return %c0_i32, %c0_i32_0 : i32, i32
  }
  func.func @transform_7(%arg0: i32) -> (i32, i32) {
    %c0_i32 = arith.constant 0 : i32
    %c0_i32_0 = arith.constant 0 : i32
    %c0_i32_1 = arith.constant 0 : i32
    return %c0_i32, %c0_i32_0 : i32, i32
  }
  func.func @transform_8(%arg0: i32) -> (i32, i32) {
    %c0_i32 = arith.constant 0 : i32
    %c0_i32_0 = arith.constant 0 : i32
    %c0_i32_1 = arith.constant 0 : i32
    return %c0_i32, %c0_i32_0 : i32, i32
  }
  func.func @transform_9(%arg0: i32) -> (i32, i32, i32) {
    %c0_i32 = arith.constant 0 : i32
    %c0_i32_0 = arith.constant 0 : i32
    %c0_i32_1 = arith.constant 0 : i32
    return %arg0, %c0_i32, %c0_i32_0 : i32, i32, i32
  }
  func.func @transform_10(%arg0: i32) -> (i32, i32, i32) {
    %c0_i32 = arith.constant 0 : i32
    %c0_i32_0 = arith.constant 0 : i32
    %c0_i32_1 = arith.constant 0 : i32
    return %arg0, %c0_i32, %c0_i32_0 : i32, i32, i32
  }
}

</mosaic_0001>

<bundles_post_ra>
// kernel: tpu_custom_call.1
= control target key start
LH: loop header
LB: loop body
LE: loop exit
PB: predicated region body
PF: predicated region fallthrough
CT: control target
= control target key end

     0   :  { %s1548_s0 = inlined_call_operand.vmem [shape: f32[2,4,256], index: 0, kind: input, shape index: {}]   ;;  %s1549_s1 = inlined_call_operand.vmem [shape: f32[2,16,1], index: 1, kind: input, shape index: {}]   ;;  %s1550_s2 = inlined_call_operand.vmem [shape: f32[64,4], index: 2, kind: input, shape index: {}]   ;;  %s1551_s3 = inlined_call_operand.vmem [shape: f32[64,1], index: 3, kind: input, shape index: {}]   ;;  %s1552_s4 = inlined_call_operand.vmem [shape: f32[32,16], index: 4, kind: input, shape index: {}]   ;;  %s1553_s5 = inlined_call_operand.vmem [shape: f32[32,1], index: 5, kind: input, shape index: {}]   ;;  %s1554_s6 = inlined_call_operand.vmem [shape: f32[32,4], index: 6, kind: input, shape index: {}]   ;;  %s1555_s7 = inlined_call_operand.vmem [shape: f32[2,32], index: 7, kind: input, shape index: {}]   ;;  %s1556_s8 = inlined_call_operand.vmem [shape: f32[2,1], index: 8, kind: input, shape index: {}]   ;;  %s1557_s9 = inlined_call_operand.vmem [shape: f32[2,128,1], index: 9, kind: output, shape index: {0}]   ;;  %s1558_s10 = inlined_call_operand.hbm [shape: f32[2,2,256], index: 10, kind: output, shape index: {1}]  }
   0x1   :  { %1559 = sst [smem:[#allocation5_spill]] %s1548_s0 }
   0x2   :  { %16 = vsyncpa [#allocation3], 0 }
   0x3   :  { %18 = vsyncpa [#allocation3 + $0x1], 0  ;;  %s1287_s13 = smov 0   ;;  %s1289_s14 = smov 0  }
   0x4   :  { %s1291_s15 = smov 0   ;;  %s1293_s16 = smov 0  }
   0x5 LB: > { %s1308_s17 = sadd.s32 4294967295, %s1227_s16   ;;  %s1039_s18 = sadd.s32 4294967294, %s1227_s16   ;;  %s1227_s16 = sphi %s1293_s16, %s1566_s16   ;;  %s1223_s15 = sphi %s1291_s15, %s1565_s15   ;;  %s1219_s14 = sphi %s1289_s14, %s1564_s14   ;;  %s1215_s13 = sphi %s1287_s13, %s1563_s13  }
   0x6   : > { %s1312_s19 = sadd.s32 1, %s1227_s16   ;;  %s256_s20 = sadd.s32 1, %s1223_s15 }
   0x7   : > { %s253_s21 = ssub.s32 %s1227_s16, %s1312_s19  ;;  %p266_p0 = scmp.ne.s32.totalorder %s1223_s15, %s1219_s14 }
   0x8   : > { %p254_p1 = scmp.eq.s32.totalorder %s253_s21, 0  ;;  %p267_p2 = scmp.eq.s32.totalorder %s1308_s17, 1 }
   0x9   : > { %p272_p3 = scmp.ne.s32.totalorder %s1219_s14, %s1215_s13  ;;  %p273_p4 = scmp.eq.s32.totalorder %s1039_s18, 1 }
   0xa   : > { %s1323_s22 = scalar_select %p254_p1, %s1223_s15, %s256_s20  }
   0xb   : > { %p1325_p5 = por %p267_p2, %p266_p0  ;;  %p1329_p6 = por %p273_p4, %p272_p3 }
   0xc   : > { %p1042_p7 = scmp.ge.s32.totalorder %s1227_s16, 1  ;;  %p328_p8 = scmp.lt.s32.totalorder %s1227_s16, 3 }
   0xe   : > { %p329_p9 = pnand %p1042_p7, %p328_p8 }
   0xf   : > { %p376_p10 = scmp.lt.s32.totalorder (!%p329_p9), %s1308_s17, 1  ;;  %s1562_s0 = sld [smem:[#allocation5_spill]] (!%p329_p9) }
  0x10   : > { %332 = sbr.rel (%p329_p9) target bundleno = 953 (0x3b9), region = 56  ;;  %s1079_s30 = sshll.u32 (!%p329_p9), %s1308_s17, 6 }
  0x11   : > { %s1231_s27 = smov (!%p329_p9), [#allocation2]  }
  0x15   : > { %s1337_s25 = scalar_select %p376_p10, %s1308_s17, 1  ;;  %vm395_vm0 = vcmask 1043456   ;;  %v402_v5 = vld [vmem:[%s1550_s2] sm:$0xff]  ;;  %vm418_vm1 = vcmask 31744   ;;  %v403_v8 = vld [vmem:[%s1550_s2 + $0x8] sm:$0xff]  ;;  %v404_v9 = vld [vmem:[%s1550_s2 + $0x10] sm:$0xff] }
  0x16   : > { %1097 = vmatprep.mubr.msk.f32.mxu0 %vm418_vm1, %v402_v5  ;;  %v405_v10 = vld [vmem:[%s1550_s2 + $0x18] sm:$0xff]  ;;  %v406_v11 = vld [vmem:[%s1550_s2 + $0x20] sm:$0xff]  ;;  %v407_v12 = vld [vmem:[%s1550_s2 + $0x28] sm:$0xff]  ;;  %vm571_vm2 = vcmask 130048   ;;  %vm669_vm3 = vcmask 7168   ;;  %v1229_v16 = vmov 0.0  }
  0x17   : > { %s1076_s26 = sshll.u32 %s1337_s25, 3  ;;  %v408_v13 = vld [vmem:[%s1550_s2 + $0x30] sm:$0xff]  ;;  %v409_v14 = vld [vmem:[%s1550_s2 + $0x38] sm:$0xff]  ;;  %v563_v15 = vld [vmem:[%s1552_s4] sm:$0xff]  ;;  %s1078_s28 = sshll.u32 %s1337_s25, 7  ;;  %v1230_v60 = vmov 0  }
  0x18   : > { %s380_s29 = scalar_lea.vmem %s1562_s0, %s1076_s26  ;;  %1113 = vmatprep.mubr.msk.f32.mxu1 %vm571_vm2, %v563_v15  ;;  %s1395_s11 = scalar_lea.vmem %s1557_s9, %s1078_s28  ;;  %v411_v17 = vld [vmem:[%s1551_s3 + $0x8] sm:$0xff]  ;;  %v410_v19 = vld [vmem:[%s1551_s3] sm:$0xff]  ;;  %v413_v22 = vld [vmem:[%s1551_s3 + $0x18] sm:$0xff]  ;;  %1161 = vset.pattern.permute.xlu1 %v1230_v60  ;;  %vm833_vm4 = vcmask 261120  }
  0x19   : > { %v1343_v0 = vld [vmem:[%s380_s29] sm:$0xff]  ;;  %684 = vst.msk [vmem:[%s1395_s11 + $0x70] sm:$0xff] %vm669_vm3, %v1229_v16  ;;  %685 = vst.msk [vmem:[%s1395_s11 + $0x78] sm:$0xff] %vm669_vm3, %v1229_v16  ;;  %v412_v25 = vld [vmem:[%s1551_s3 + $0x10] sm:$0xff]  ;;  %s1077_s29 = sshll.u32 %s1337_s25, 4  ;;  %1160 = vset.pattern.permute.xlu0 %v1230_v60  ;;  %s373_s28 = sand.u32 1, %s1219_s14  }
  0x1a   : > { %v1347_v1 = vcombine.high %v1343_v0, %v1343_v0  ;;  %v396_v2 = vsel %vm395_vm0, %v1343_v0, 0.0  ;;  %v415_v28 = vld [vmem:[%s1551_s3 + $0x28] sm:$0xff]  ;;  %v414_v31 = vld [vmem:[%s1551_s3 + $0x20] sm:$0xff]  ;;  %v417_v34 = vld [vmem:[%s1551_s3 + $0x38] sm:$0xff]  ;;  %s385_s18 = scalar_lea.vmem %s1549_s1, %s1077_s29  ;;  %s1043_s29 = sshll.u32 %s373_s28, 2 }
  0x1b   : > { %v416_v37 = vld [vmem:[%s1551_s3 + $0x30] sm:$0xff]  ;;  %v552_v45 = vld [vmem:[%s385_s18 + $0x8] sm:$0xff]  ;;  %v551_v47 = vld [vmem:[%s385_s18] sm:$0xff]  ;;  %s375_s12 = scalar_lea.vmem [#allocation2], %s1043_s29  ;;  %s941_s25 = scalar_lea.hbm %s1558_s10, %s1079_s30 }
  0x1c   : > { %v397_v3 = vsel %vm395_vm0, %v1347_v1, 0.0  ;;  %v564_v53 = vld [vmem:[%s1552_s4 + $0x8] sm:$0xff]  ;;  %v565_v54 = vld [vmem:[%s1552_s4 + $0x10] sm:$0xff]  ;;  %v566_v55 = vld [vmem:[%s1552_s4 + $0x18] sm:$0xff]  ;;  %s943_s18 = sshll.u32 %s375_s12, 4  ;;  %s926_s26 = scalar_lea.sflag [#allocation3], %s373_s28  ;;  %s944_s18 = int_to_ptr.vmem [resolvable:$true] %s943_s18 }
  0x1d   : > { %v398_v4 = vadd.f32 %v397_v3, %v396_v2  ;;  %v686_v56 = vld [vmem:[%s1554_s6] sm:$0xff]  ;;  %v687_v57 = vld [vmem:[%s1554_s6 + $0x8] sm:$0xff]  ;;  %v688_v58 = vld [vmem:[%s1554_s6 + $0x10] sm:$0xff]  ;;  %s1171_s0 = sshll.u32 %s1231_s27, 4  ;;  %s1172_s0 = int_to_ptr.vmem [resolvable:$false] %s1171_s0 }
  0x1e   : > { %v689_v59 = vld [vmem:[%s1554_s6 + $0x18] sm:$0xff]  ;;  %v568_v61 = vld [vmem:[%s1553_s5 + $0x8] sm:$0xff]  ;;  %v567_v63 = vld [vmem:[%s1553_s5] sm:$0xff]  ;;  %s1173_s17 = scalar_lea.vmem %s1172_s0, 128  ;;  %p1174_p0 = scmp.lt.s32.totalorder %s944_s18, %s1172_s0 }
  0x1f   : > { %399 = vadd.xlane.f32.xlu0 %v398_v4  ;;  %v570_v2 = vld [vmem:[%s1553_s5 + $0x18] sm:$0xff]  ;;  %v569_v5 = vld [vmem:[%s1553_s5 + $0x10] sm:$0xff] }
  0xa8   : > { %v400_v6 = vpop.xlane.xlu0 %399 }
  0xa9   : > { %v401_v7 = vmul.f32 0.00390625, %v400_v6 }
  0xab   : > { %1095 = vmatprep.subr.msk.mxu0 %vm395_vm0, %v401_v7 }
  0xac   : > { %1096 = vmatpush3.msk.msra.mxu0 %vm395_vm0, %v401_v7 }
  0xad   : > { %1098 = vmatmul.mubr.msk.f32.vlgmr.msra.gmra.mxu0 %vm418_vm1, %v403_v8 }
  0xae   : > { %1100 = vmatprep.mubr.msk.f32.mxu0 %vm418_vm1, %v404_v9  ;;  %v691_v9 = vld [vmem:[%s1556_s8] sm:$0x3] }
  0xb1   : > { %1101 = vmatmul.mubr.msk.f32.gmra.mxu0 %vm418_vm1, %v405_v10 }
  0xb2   : > { %1103 = vmatprep.mubr.msk.f32.mxu0 %vm418_vm1, %v406_v11 }
  0xb5   : > { %1104 = vmatmul.mubr.msk.f32.gmra.mxu0 %vm418_vm1, %v407_v12 }
  0xb6   : > { %1106 = vmatprep.mubr.msk.f32.mxu0 %vm418_vm1, %v408_v13 }
  0xb9   : > { %1107 = vmatmul.mubr.msk.f32.gmra.mxu0 %vm418_vm1, %v409_v14 }
  0xba   : > { %901 = vmatprep.mubr.f32.mxu0 %v1229_v16 }
 0x16d   : > { %v1099_v18 = vpop.f32.mrf.mxu0 }
 0x16e   : > { %v518_v20 = vadd.f32 %v1099_v18, %v411_v17 }
 0x16f   : > { %v512_v21 = vpop.f32.mrf.mxu0 }
 0x170   : > { %671 = vst.msk [vmem:[%s1395_s11 + $0x8] sm:$0xff] %vm669_vm3, %v518_v20  ;;  %v513_v23 = vadd.f32 %v512_v21, %v410_v19 }
 0x171   : > { %v1102_v24 = vpop.f32.mrf.mxu0 }
 0x172   : > { %670 = vst.msk [vmem:[%s1395_s11] sm:$0xff] %vm669_vm3, %v513_v23  ;;  %v528_v26 = vadd.f32 %v1102_v24, %v413_v22 }
 0x173   : > { %v522_v27 = vpop.f32.mrf.mxu0 }
 0x174   : > { %673 = vst.msk [vmem:[%s1395_s11 + $0x18] sm:$0xff] %vm669_vm3, %v528_v26  ;;  %v523_v29 = vadd.f32 %v522_v27, %v412_v25 }
 0x175   : > { %v1105_v30 = vpop.f32.mrf.mxu0 }
 0x176   : > { %672 = vst.msk [vmem:[%s1395_s11 + $0x10] sm:$0xff] %vm669_vm3, %v523_v29  ;;  %v538_v32 = vadd.f32 %v1105_v30, %v415_v28 }
 0x177   : > { %v532_v33 = vpop.f32.mrf.mxu0 }
 0x178   : > { %675 = vst.msk [vmem:[%s1395_s11 + $0x28] sm:$0xff] %vm669_vm3, %v538_v32  ;;  %v533_v35 = vadd.f32 %v532_v33, %v414_v31 }
 0x179   : > { %v1108_v36 = vpop.f32.mrf.mxu0 }
 0x17a   : > { %674 = vst.msk [vmem:[%s1395_s11 + $0x20] sm:$0xff] %vm669_vm3, %v533_v35  ;;  %v548_v38 = vadd.f32 %v1108_v36, %v417_v34 }
 0x17b   : > { %v542_v39 = vpop.f32.mrf.mxu0 }
 0x17c   : > { %v554_v40 = vmul.f32 0.5, %v548_v38  ;;  %677 = vst.msk [vmem:[%s1395_s11 + $0x38] sm:$0xff] %vm669_vm3, %v548_v38  ;;  %v543_v41 = vadd.f32 %v542_v39, %v416_v37  ;;  %v690_v38 = vld [vmem:[%s1555_s7] sm:$0x3] }
 0x17e   : > { %v557_v42 = vmul.f32 1.442695, %v554_v40  ;;  %v553_v43 = vmul.f32 0.5, %v543_v41  ;;  %676 = vst.msk [vmem:[%s1395_s11 + $0x30] sm:$0xff] %vm669_vm3, %v543_v41 }
 0x180   : > { %1163 = vpow2.f32 %v557_v42  ;;  %v555_v44 = vmul.f32 1.442695, %v553_v43 }
 0x182   : > { %1165 = vpow2.f32 %v555_v44 }
 0x18d   : > { %v1164_v46 = vpop.eup %1163 }
 0x18e   : > { %v560_v48 = vmul.f32 %v1164_v46, %v552_v45 }
 0x18f   : > { %v1166_v49 = vpop.eup %1165 }
 0x190   : > { %v562_v50 = vadd.f32 %v560_v48, %v538_v32  ;;  %v559_v51 = vmul.f32 %v1166_v49, %v551_v47 }
 0x192   : > { %1109 = vmatprep.subr.mxu1 %v562_v50  ;;  %679 = vst.msk [vmem:[%s1395_s11 + $0x48] sm:$0xff] %vm669_vm3, %v562_v50  ;;  %v561_v52 = vadd.f32 %v559_v51, %v533_v35 }
 0x193   : > { %1110 = vmatpush3.msra.mxu1 %v562_v50 }
 0x194   : > { %1111 = vmatprep.subr.mxu1 %v561_v52  ;;  %678 = vst.msk [vmem:[%s1395_s11 + $0x40] sm:$0xff] %vm669_vm3, %v561_v52 }
 0x195   : > { %1112 = vmatpush3.msra.mxu1 %v561_v52 }
 0x196   : > { %1114 = vmatmul.mubr.msk.f32.vlgmr.msra.gmra.mxu1 %vm571_vm2, %v564_v53  ;;  %1063 = vmatprep.subr.msk.mxu1 %vm395_vm0, %v1347_v1 }
 0x197   : > { %1116 = vmatprep.mubr.msk.f32.mxu1 %vm571_vm2, %v565_v54  ;;  %1064 = vmatpush1.msk.msra.mxu1 %vm395_vm0, %v1343_v0 }
 0x19a   : > { %1117 = vmatmul.mubr.msk.f32.gmra.mxu1 %vm571_vm2, %v566_v55 }
 0x19b   : > { %795 = vmatprep.mubr.f32.mxu1 %v1229_v16 }
 0x19e   : > { %1065 = vmatmul.mubr.msk.f32.vlgmr.msra.gmra.mxu1 %vm418_vm1, %v686_v56 }
 0x19f   : > { %801 = vmatprep.mubr.f32.mxu1 %v1229_v16 }
 0x1a2   : > { %1066 = vmatmul.mubr.msk.f32.gmra.mxu1 %vm418_vm1, %v687_v57 }
 0x1a3   : > { %807 = vmatprep.mubr.f32.mxu1 %v1229_v16 }
 0x1a6   : > { %1067 = vmatmul.mubr.msk.f32.gmra.mxu1 %vm418_vm1, %v688_v58 }
 0x1a7   : > { %813 = vmatprep.mubr.f32.mxu1 %v1229_v16 }
 0x1aa   : > { %1068 = vmatmul.mubr.msk.f32.gmra.mxu1 %vm418_vm1, %v689_v59 }
 0x256   : > { %v1115_v62 = vpop.f32.mrf.mxu1 }
 0x257   : > { %v656_v0 = vadd.f32 %v1115_v62, %v568_v61 }
 0x258   : > { %v650_v1 = vpop.f32.mrf.mxu1 }
 0x259   : > { %681 = vst.msk [vmem:[%s1395_s11 + $0x58] sm:$0xff] %vm669_vm3, %v656_v0  ;;  %v651_v3 = vadd.f32 %v650_v1, %v567_v63  ;;  %700 = vperm.xlu1 %1161, %v656_v0  }
 0x25a   : > { %v1118_v4 = vpop.f32.mrf.mxu1 }
 0x25b   : > { %680 = vst.msk [vmem:[%s1395_s11 + $0x50] sm:$0xff] %vm669_vm3, %v651_v3  ;;  %v666_v6 = vadd.f32 %v1118_v4, %v570_v2 }
 0x25c   : > { %v660_v7 = vpop.f32.mrf.mxu1 }
 0x25d   : > { %683 = vst.msk [vmem:[%s1395_s11 + $0x68] sm:$0xff] %vm669_vm3, %v666_v6  ;;  %v661_v8 = vadd.f32 %v660_v7, %v569_v5  ;;  %710 = vperm.xlu0 %1160, %v666_v6  }
 0x25e   : > { %v797_v10 = vpop.f32.mrf.mxu1 }
 0x25f   : > { %682 = vst.msk [vmem:[%s1395_s11 + $0x60] sm:$0xff] %vm669_vm3, %v661_v8  ;;  %705 = vperm.xlu1 %1161, %v661_v8   ;;  %s1167_s11 = scalar_lea.vmem %s944_s18, 64 }
 0x260   : > { %v799_v11 = vpop.f32.mrf.mxu1  ;;  %p1168_p11 = scmp.ne.s32.totalorder %s944_s18, %s1167_s11  ;;  %p1175_p1 = scmp.lt.s32.totalorder %s1173_s17, %s1167_s11 }
 0x262   : > { %v803_v12 = vpop.f32.mrf.mxu1  ;;  %p1169_p12 = pnand %p1168_p11, %p1325_p5  ;;  %p1176_p2 = por %p1175_p1, %p1174_p0 }
 0x263   : > { %695 = vperm.xlu1 %1161, %v651_v3  }
 0x264   : > { %v805_v13 = vpop.f32.mrf.mxu1  ;;  %p1170_p13 = pneg %p1169_p12 }
 0x266   : > { %v809_v14 = vpop.f32.mrf.mxu1  ;;  %p1177_p3 = pnand %p1176_p2, %p1170_p13 }
 0x267   : > { %830 = vperm.xlu1 %1161, %v691_v9  }
 0x268   : > { %v811_v15 = vpop.f32.mrf.mxu1 }
 0x26a   : > { %v815_v16 = vpop.f32.mrf.mxu1 }
 0x26c   : > { %v817_v18 = vpop.f32.mrf.mxu1 }
 0x2d4   : > { %v701_v17 = vpop.permute.xlu1 %700 }
 0x2d5   : > { %v806_v22 = vadd.f32 %v805_v13, %v701_v17  ;;  %v804_v28 = vadd.f32 %v803_v12, %v701_v17 }
 0x2d7   : > { %v823_v32 = vmax.f32 %v806_v22, 0.0  ;;  %v822_v35 = vmax.f32 %v804_v28, 0.0 }
 0x2d8   : > { %v711_v19 = vpop.permute.xlu0 %710 }
 0x2d9   : > { %v816_v20 = vadd.f32 %v815_v16, %v711_v19  ;;  %v818_v21 = vadd.f32 %v817_v18, %v711_v19 }
 0x2da   : > { %v706_v23 = vpop.permute.xlu1 %705 }
 0x2db   : > { %v826_v24 = vmax.f32 %v816_v20, 0.0  ;;  %v827_v25 = vmax.f32 %v818_v21, 0.0  ;;  %v810_v26 = vadd.f32 %v809_v14, %v706_v23  ;;  %v812_v27 = vadd.f32 %v811_v15, %v706_v23 }
 0x2dd   : > { %v824_v29 = vmax.f32 %v810_v26, 0.0  ;;  %v825_v30 = vmax.f32 %v812_v27, 0.0  ;;  %861 = vmatprep.subr.mxu0 %v827_v25 }
 0x2de   : > { %862 = vmatpush1.msra.mxu0 %v826_v24  ;;  %v696_v31 = vpop.permute.xlu1 %695 }
 0x2df   : > { %v798_v33 = vadd.f32 %v797_v10, %v696_v31  ;;  %v800_v34 = vadd.f32 %v799_v11, %v696_v31  ;;  %863 = vmatprep.subr.mxu0 %v825_v30 }
 0x2e0   : > { %864 = vmatpush1.msra.mxu0 %v824_v29 }
 0x2e1   : > { %v820_v36 = vmax.f32 %v798_v33, 0.0  ;;  %v821_v37 = vmax.f32 %v800_v34, 0.0  ;;  %865 = vmatprep.subr.mxu0 %v823_v32 }
 0x2e2   : > { %866 = vmatpush1.msra.mxu0 %v822_v35  ;;  %v831_v40 = vpop.permute.xlu1 %830 }
 0x2e3   : > { %867 = vmatprep.subr.mxu0 %v821_v37 }
 0x2e4   : > { %868 = vmatpush1.msra.mxu0 %v820_v36 }
 0x2e5   : > { %1069 = vmatmul.mubr.msk.f32.vlgmr.msra.gmra.mxu0 %vm833_vm4, %v690_v38 }
 0x3a5   : > { %v903_v39 = vpop.f32.mrf.mxu0 }
 0x3a6   : > { %v904_v42 = vadd.f32 %v903_v39, %v831_v40 }
 0x3a7   : > { %v905_v41 = vpop.f32.mrf.mxu0 }
 0x3a8   : > { %v906_v43 = vadd.f32 %v905_v41, %v831_v40 }
 0x3aa   : > { %v910_v44 = vcombine.low %v904_v42, %v906_v43 }
 0x3ac   : > { %1070 = vst.sshfl [vmem:[%s375_s12] sm:$0x33 pattern:$0x76325410] %v910_v44 }
 0x3ad   : > { %1180 = shalt.err (!%p1177_p3)
}
 0x3ae   : > { %s1181_s29 = scalar_lea.hbm %s941_s25, 64  ;;  %s1185_s12 = scalar_lea.hbm %s1558_s10, 128 }
 0x3af   : > { %p1182_p4 = scmp.ne.s32.totalorder %s941_s25, %s1181_s29  ;;  %p1186_p9 = scmp.lt.s32.totalorder %s941_s25, %s1558_s10 }
 0x3b0   : > { %p1187_p10 = scmp.lt.s32.totalorder %s1185_s12, %s1181_s29 }
 0x3b1   : > { %p1183_p7 = pnand %p1182_p4, %p1325_p5 }
 0x3b2   : > { %p1188_p11 = por %p1187_p10, %p1186_p9 }
 0x3b3   : > { %p1184_p8 = pneg %p1183_p7 }
 0x3b5   : > { %p1189_p12 = pnand %p1188_p11, %p1184_p8 }
 0x3b7   : > { %1192 = shalt.err (!%p1189_p12)
}
 0x3b8   : > { %1119 = dma.vmem_to_hbm [thread:$0]  (%p1325_p5), %s944_s18, 64, %s941_s25, %s926_s26  }
 0x3b9 PF: > { %p1125_p13 = scmp.ge.s32.totalorder %s1227_s16, 2  ;;  %s963_s0 = sand.u32 1, %s1215_s13  }
 0x3ba   : > { %s964_s11 = scalar_lea.sflag [#allocation3], %s963_s0 }
 0x3bb   : > { %p1122_p0 = pnand %p1125_p13, %p1329_p6 }
 0x3bd   : > { %p1123_p1 = pneg %p1122_p0 }
 0x3bf   : > { %1210 = dma.done.wait (%p1123_p1), %s964_s11, 64  }
 0x3c0   : > { %1212 = vsyncadd (%p1123_p1), %s964_s11, 4294967232  ;;  %p21_p2 = scmp.ge.s32.totalorder %s1312_s19, 4   ;;  %s1563_s13 = smov %s1219_s14 }
 0x3c1   : > { %s1564_s14 = smov %s1223_s15  ;;  %s1565_s15 = smov %s1323_s22 }
 0x3c2   : > { %s1566_s16 = smov %s1312_s19  ;;  %23 = sbr.rel (!%p21_p2) target bundleno = 5 (0x5), region = 106 }
 0x3c7   :  { %969 = vsyncpa [#allocation3], 1 }
 0x3c8   :  { %971 = vsyncpa [#allocation3 + $0x1], 1 }

</bundles_post_ra>
